<compile_context>
chip_gen: v7x
topology: tpu7x:2x2x1
jax: 0.10.0
libtpu: 0.0.40
codegen_flags: <defaults>
</compile_context>

<pallas_src>
import functools

import jax
import jax.numpy as jnp
import numpy as np
from jax import lax
from jax.experimental import pallas as pl
from jax.experimental.pallas import tpu as pltpu


# --------------------------------------------------------------------------
# Helpers
# --------------------------------------------------------------------------
def _round_up(x, m):
    return ((x + m - 1) // m) * m


def _sublane_pack(dtype):
    """Sub-lane packing factor: 8 for 4-byte, 16 for 2-byte, 32 for 1-byte."""
    return max(8, 32 // jnp.dtype(dtype).itemsize)


def _pick_vmem_limit(needed_bytes):
    """Derive a safe vmem_limit_bytes for the current TPU generation."""
    try:
        cap = getattr(pltpu.get_tpu_info(), "vmem_capacity_bytes", None)
    except Exception:
        cap = None
    if not cap:
        cap = 64 * 1024 * 1024          # conservative fallback: v7x per-TC VMEM
    ceiling = (cap * 3) // 4            # headroom for Mosaic internal scratch
    floor = 32 * 1024 * 1024
    return int(min(ceiling, max(floor, int(needed_bytes))))


def prepare_row_parallel_lora_weights(weight, a_buffer, b_buffer):
    """One-time (weight-load-time) layout prep.  Do NOT call per forward: it
    pays a full read+write of W which would roughly double the op's HBM
    traffic in decode.

      weight   [N, K]     ->  wt [K, N]         (contraction on RHS sublane dim)
      a_buffer [L, r, K]  ->  at [L, K, r_pad]  (r zero-padded to sublane pack)
      b_buffer [L, N, r]  ->  bt [L, r_pad, N]  (lane-dense N output)
    """
    L, r, _ = a_buffer.shape
    pack = _sublane_pack(a_buffer.dtype)      # 8 for f32, 16 for bf16
    r_pad = _round_up(r, pack)
    wt = jnp.transpose(weight, (1, 0))
    at = jnp.transpose(a_buffer, (0, 2, 1))   # [L, K, r]
    bt = jnp.transpose(b_buffer, (0, 2, 1))   # [L, r, N]
    if r_pad != r:
        at = jnp.pad(at, ((0, 0), (0, 0), (0, r_pad - r)))
        bt = jnp.pad(bt, ((0, 0), (0, r_pad - r), (0, 0)))
    return wt, at, bt


# --------------------------------------------------------------------------
# Kernel 1: LoRA shrink  xa = segment_gemm(x, A) * scaling, row-masked
# --------------------------------------------------------------------------
def _lora_shrink_kernel(seg_ref, widx_ref, x_ref, at_ref, scal_ref, xa_ref, *, tm):
    si = pl.program_id(0)
    seg = pl.program_id(1)

    @pl.when(seg == 0)
    def _():
        xa_ref[...] = jnp.zeros_like(xa_ref)

    start = seg_ref[seg]
    end = seg_ref[seg + 1]
    row0 = si * tm
    overlaps = (end > row0) & (start < row0 + tm) & (end > start)

    @pl.when(overlaps)
    def _():
        w = widx_ref[seg]
        scale = scal_ref[w]                                   # per-adapter scaling
        xa = jnp.dot(x_ref[...], at_ref[0],
                     preferred_element_type=jnp.float32)      # [tm, r_pad]
        rows = row0 + lax.broadcasted_iota(jnp.int32, (tm, 1), 0)
        in_seg = (rows >= start) & (rows < end)
        xa_ref[...] += jnp.where(in_seg, xa * scale, 0.0)


def _lora_shrink(x, at, seg_indptr, weight_indices, scalings, *, tm):
    """xa[row] = x[row] @ A[w(row)].T * scaling[w(row)]  (zero outside segments)."""
    S, K = x.shape
    _, _, r_pad = at.shape
    bs = weight_indices.shape[0]
    isz = jnp.dtype(x.dtype).itemsize

    def x_map(si, seg, seg_ref, widx_ref):
        return (si, 0)

    def a_map(si, seg, seg_ref, widx_ref):
        # Overlap-aware: non-overlapping / empty segments reuse block 0 so
        # consecutive skipped steps do not trigger a fresh A DMA.
        start = seg_ref[seg]
        end = seg_ref[seg + 1]
        row0 = si * tm
        ov = (end > row0) & (start < row0 + tm) & (end > start)
        return (jnp.where(ov, widx_ref[seg], 0), 0, 0)

    def out_map(si, seg, seg_ref, widx_ref):
        return (si, 0)

    # TODO(synk): for very large K, add a third (K-streaming) grid axis here
    #             like the main kernel; the shrink is tiny so full-K x with a
    #             modest tm is fine for typical hidden sizes.
    vmem_needed = (2 * tm * K * isz                 # x tile (double-buffered)
                   + 2 * K * max(r_pad, 128) * isz  # A tile (lane-padded)
                   + 2 * tm * 128 * 4)              # xa out tile (lane-padded f32)
    vmem_needed = vmem_needed + vmem_needed // 4 + (1 << 20)

    kernel = functools.partial(_lora_shrink_kernel, tm=tm)
    return pl.pallas_call(
        kernel,
        out_shape=jax.ShapeDtypeStruct((S, r_pad), jnp.float32),
        grid_spec=pltpu.PrefetchScalarGridSpec(
            num_scalar_prefetch=2,                   # seg_indptr, weight_indices
            grid=(S // tm, bs),
            in_specs=[
                pl.BlockSpec((tm, K), x_map),        # x tile (full K)
                pl.BlockSpec((1, K, r_pad), a_map),  # A[w].T (natural K-major rows)
                pl.BlockSpec(memory_space=pltpu.MemorySpace.SMEM),  # scalings [L]
            ],
            out_specs=pl.BlockSpec((tm, r_pad), out_map),
        ),
        compiler_params=pltpu.CompilerParams(
            dimension_semantics=("parallel", "arbitrary"),
            vmem_limit_bytes=_pick_vmem_limit(vmem_needed)),
    )(seg_indptr, weight_indices, x, at, scalings)


# --------------------------------------------------------------------------
# Kernel 2: fused base matmul + LoRA expand + bias
# --------------------------------------------------------------------------
def _fused_base_expand_kernel(seg_ref, widx_ref, x_ref, wt_ref, bias_ref,
                              xa_ref, bt_ref, out_ref, acc_ref, *, nk, tm):
    si = pl.program_id(0)
    j = pl.program_id(2)
    nj = pl.num_programs(2)

    # ---- Base matmul phase: one streamed K tile of x @ W per step ----
    @pl.when(j == 0)
    def _():   # first K tile writes the accumulator directly (no zero-fill)
        acc_ref[...] = jnp.dot(x_ref[...], wt_ref[...],
                               preferred_element_type=jnp.float32)

    @pl.when((j > 0) & (j < nk))
    def _():
        acc_ref[...] += jnp.dot(x_ref[...], wt_ref[...],
                                preferred_element_type=jnp.float32)

    # ---- LoRA expand phase: one segment per step, tiny [tm,r]x[r,tn] dot ----
    @pl.when(j >= nk)
    def _():
        seg = j - nk
        start = seg_ref[seg]
        end = seg_ref[seg + 1]
        row0 = si * tm
        overlaps = (end > row0) & (start < row0 + tm) & (end > start)

        @pl.when(overlaps)
        def _():
            rows = row0 + lax.broadcasted_iota(jnp.int32, (tm, 1), 0)
            in_seg = (rows >= start) & (rows < end)
            xa = jnp.where(in_seg, xa_ref[...], 0.0)   # pre-scaled in shrink pass
            acc_ref[...] += jnp.dot(xa.astype(bt_ref.dtype), bt_ref[0],
                                    preferred_element_type=jnp.float32)

    # ---- Writeback with bias, once per (S, N) output tile ----
    @pl.when(j == nj - 1)
    def _():
        out_ref[...] = (acc_ref[...]
                        + bias_ref[...].astype(jnp.float32)).astype(out_ref.dtype)


def row_parallel_linear_with_lora(x, wt, bias, at, bt, seg_indptr,
                                  weight_indices, scaling,
                                  *, tm=256, tn=256, tk=512, tm_shrink=256,
                                  w_buffers=2):
    """Forward of RowParallelLinearWithLoRA (tp_size == 1, LoRA enabled).

    Weights must be pre-transposed ONCE at load time with
    `prepare_row_parallel_lora_weights`: wt [K,N], at [L,K,r_pad],
    bt [L,r_pad,N].  `scaling` may be a scalar (matches the reference module)
    or a per-adapter vector of shape [L].

    Returns (output, None)  -- the skip_bias_add=False path.

    Tile guidance (perf review):
      * tm >= 256 (512 for prefill) so the streamed W tile is compute-bound.
      * tn: 128-256 on v5e, 256-512 on v6e/v7x; in decode pick tn so that
        N // tn >= 2 (keeps both v7x TensorCores fed).
      * tk: multiple of 128 (256+ on v6e/v7x).
      * Keep x/W/A/B in bf16 in production (f32 accumulation is built in; the
        xa -> bf16 cast before the expand dot is a small documented precision
        loss vs the f32 reference chain).
      * w_buffers=3 deepens W pipelining if the W DMA is still exposed.
    """
    S, K = x.shape
    K2, N = wt.shape
    L, r_pad, N2 = bt.shape
    bs = weight_indices.shape[0]
    assert K2 == K and N2 == N and at.shape == (L, K, r_pad), "bad weight layout"

    tm = min(tm, S)
    tn = min(tn, N)
    tk = min(tk, K)
    tm_shrink = min(tm_shrink, S)
    assert S % tm == 0 and N % tn == 0 and K % tk == 0 and S % tm_shrink == 0, (
        "S/N/K must be divisible by tm/tn/tk (pad the ragged batch on the caller side)")
    assert (tm % 8 == 0 or tm == S) and (tm_shrink % 8 == 0 or tm_shrink == S)
    assert tn % 128 == 0 or tn == N
    assert tk % 128 == 0 or tk == K
    nk = K // tk

    seg_indptr = jnp.asarray(seg_indptr, jnp.int32)
    weight_indices = jnp.asarray(weight_indices, jnp.int32)
    # TODO(synk): no runtime validation that weight_indices < L and seg_indptr
    #             is monotone / <= S (only DMA-level bounds checks apply).
    scalings = jnp.broadcast_to(
        jnp.asarray(scaling, jnp.float32).reshape(-1), (L,))

    # Pass 1: LoRA shrink (once per row, not per (S tile, N tile)).
    xa = _lora_shrink(x, at, seg_indptr, weight_indices, scalings, tm=tm_shrink)

    bias2 = bias.reshape(1, N)
    isz = jnp.dtype(x.dtype).itemsize

    def x_map(si, ni, j, seg_ref, widx_ref):
        return (si, jnp.minimum(j, nk - 1))      # K-streamed; clamped in LoRA phase

    def w_map(si, ni, j, seg_ref, widx_ref):
        return (jnp.minimum(j, nk - 1), ni)      # clamped -> no re-DMA in LoRA phase

    def bias_map(si, ni, j, seg_ref, widx_ref):
        return (0, ni)

    def xa_map(si, ni, j, seg_ref, widx_ref):
        return (si, 0)                           # tiny, fetched once per S tile

    def b_map(si, ni, j, seg_ref, widx_ref):
        seg = jnp.maximum(j - nk, 0)
        start = seg_ref[seg]
        end = seg_ref[seg + 1]
        row0 = si * tm
        ov = (j >= nk) & (end > row0) & (start < row0 + tm) & (end > start)
        # Base-phase / non-overlapping steps reuse adapter block 0 -> no DMA.
        return (jnp.where(ov, widx_ref[seg], 0), 0, ni)

    def out_map(si, ni, j, seg_ref, widx_ref):
        return (si, ni)

    w_spec = pl.BlockSpec((tk, tn), w_map)
    if w_buffers != 2:
        w_spec = pl.BlockSpec((tk, tn), w_map, pipeline_mode=pl.Buffered(w_buffers))

    vmem_needed = (2 * tm * tk * isz                 # x tile
                   + max(2, w_buffers) * tk * tn * isz   # W tile
                   + 2 * 8 * tn * isz                # bias tile (sublane-padded)
                   + 2 * tm * 128 * 4                # xa tile (lane-padded f32)
                   + 2 * max(r_pad, 8) * tn * isz    # B tile
                   + 2 * tm * tn * isz               # output tile
                   + tm * tn * 4)                    # f32 accumulator scratch
    vmem_needed = vmem_needed + vmem_needed // 4 + (1 << 20)

    kernel = functools.partial(_fused_base_expand_kernel, nk=nk, tm=tm)
    out = pl.pallas_call(
        kernel,
        out_shape=jax.ShapeDtypeStruct((S, N), x.dtype),
        grid_spec=pltpu.PrefetchScalarGridSpec(
            num_scalar_prefetch=2,                   # seg_indptr, weight_indices
            grid=(S // tm, N // tn, nk + bs),        # fused K-reduction + LoRA axis
            in_specs=[
                pl.BlockSpec((tm, tk), x_map),       # x tile (streamed over K)
                w_spec,                              # W.T tile (streamed over K)
                pl.BlockSpec((1, tn), bias_map),     # bias tile
                pl.BlockSpec((tm, r_pad), xa_map),   # pre-computed shrink output
                pl.BlockSpec((1, r_pad, tn), b_map), # B[w].T tile
            ],
            out_specs=pl.BlockSpec((tm, tn), out_map),
            scratch_shapes=[pltpu.VMEM((tm, tn), jnp.float32)],
        ),
        compiler_params=pltpu.CompilerParams(
            dimension_semantics=("parallel", "parallel", "arbitrary"),
            vmem_limit_bytes=_pick_vmem_limit(vmem_needed)),
    )(seg_indptr, weight_indices, x, wt, bias2, xa, bt)

    # skip_bias_add=False and bias is not None -> (output, None)
    return out, None


# --------------------------------------------------------------------------
# Reference + demo
# --------------------------------------------------------------------------
def _reference(x, weight, bias, a_buffer, b_buffer, seg_indptr, weight_indices,
               scaling):
    hp = lax.Precision.HIGHEST
    base = jnp.dot(x, weight.T, precision=hp)
    lora = jnp.zeros_like(base)
    bs = weight_indices.shape[0]
    for i in range(bs):
        s, e = int(seg_indptr[i]), int(seg_indptr[i + 1])
        w = int(weight_indices[i])
        xa = jnp.dot(x[s:e], a_buffer[w].T, precision=hp)
        lora = lora.at[s:e].set(jnp.dot(xa, b_buffer[w].T, precision=hp))
    return base + lora * scaling + bias[None, :]


if __name__ == "__main__":
    S, K, N, r, L = 32, 256, 256, 8, 3
    scaling = 0.5

    key = jax.random.PRNGKey(0)
    kx, kw, kb, ka, kbb = jax.random.split(key, 5)
    x = jax.random.normal(kx, (S, K), dtype=jnp.float32)
    weight = jax.random.normal(kw, (N, K), dtype=jnp.float32) * 0.05
    bias = jax.random.normal(kb, (N,), dtype=jnp.float32)
    a_buffer = jax.random.normal(ka, (L, r, K), dtype=jnp.float32) * 0.05
    b_buffer = jax.random.normal(kbb, (L, N, r), dtype=jnp.float32) * 0.05

    # Segments: rows [0,10) -> adapter 1, [10,10) empty -> adapter 0,
    # [10,28) -> adapter 2 (straddles the tm=16 S tiles); rows [28,32) get no
    # LoRA (base + bias only).
    seg_indptr = jnp.array([0, 10, 10, 28], dtype=jnp.int32)   # bs + 1
    weight_indices = jnp.array([1, 0, 2], dtype=jnp.int32)     # bs

    # One-time, load-time layout prep (not part of the per-call path).
    wt, at, bt = prepare_row_parallel_lora_weights(weight, a_buffer, b_buffer)

    out, out_bias = row_parallel_linear_with_lora(
        x, wt, bias, at, bt, seg_indptr, weight_indices, scaling,
        tm=16, tn=128, tk=128, tm_shrink=16)
    out = jax.block_until_ready(out)

    ref = _reference(x, weight, bias, a_buffer, b_buffer,
                     np.asarray(seg_indptr), np.asarray(weight_indices),
                     scaling)
    assert out_bias is None
    np.testing.assert_allclose(np.asarray(out), np.asarray(ref),
                               rtol=3e-5, atol=3e-5)
    print("KERNEL_OK")
</pallas_src>

<mosaic_0001>
module attributes {stable_mosaic.version = 11 : i64} {
  func.func @_lora_shrink_kernel(%arg0: i32, %arg1: i32, %arg2: memref<4xi32, #tpu.memory_space<smem>>, %arg3: memref<3xi32, #tpu.memory_space<smem>>, %arg4: memref<16x256xf32, #tpu.memory_space<vmem>>, %arg5: memref<1x256x8xf32, #tpu.memory_space<vmem>>, %arg6: memref<3xf32, #tpu.memory_space<smem>>, %arg7: memref<16x8xf32, #tpu.memory_space<vmem>>) attributes {dimension_semantics = [#tpu.dimension_semantics<parallel>, #tpu.dimension_semantics<arbitrary>], iteration_bounds = array<i64: 2, 3>, scalar_prefetch = 2 : i64, scratch_operands = 0 : i64, tpu.core_type = #tpu.core_type<tc>, window_params = [{transform_indices = @transform_0, window_bounds = array<i64: 16, 256>}, {transform_indices = @transform_1, window_bounds = array<i64: 1, 256, 8>}, {transform_indices = @transform_2, window_bounds = array<i64: 3>}, {transform_indices = @transform_3, window_bounds = array<i64: 16, 8>}]} {
    %c0_i32 = arith.constant 0 : i32
    %0 = arith.cmpi eq, %arg1, %c0_i32 : i32
    %1 = arith.extui %0 : i1 to i32
    %c0_i32_0 = arith.constant 0 : i32
    %2 = arith.cmpi ne, %1, %c0_i32_0 : i32
    scf.if %2 {
      %cst = arith.constant 0.000000e+00 : f32
      %17 = vector.broadcast %cst : f32 to vector<16x8xf32>
      %c0 = arith.constant 0 : index
      %c0_3 = arith.constant 0 : index
      %18 = vector.load %arg7[%c0, %c0_3] : memref<16x8xf32, #tpu.memory_space<vmem>>, vector<16x8xf32>
      tpu.vector_store %arg7[%c0, %c0_3], %17 {strides = array<i32>} : memref<16x8xf32, #tpu.memory_space<vmem>>, vector<16x8xf32>,
    } else {
    }
    %3 = arith.index_cast %arg1 : i32 to index
    %4 = memref.load %arg2[%3] : memref<4xi32, #tpu.memory_space<smem>>
    %c1_i32 = arith.constant 1 : i32
    %5 = arith.addi %arg1, %c1_i32 : i32
    %6 = arith.index_cast %5 : i32 to index
    %7 = memref.load %arg2[%6] : memref<4xi32, #tpu.memory_space<smem>>
    %c16_i32 = arith.constant 16 : i32
    %8 = arith.muli %arg0, %c16_i32 : i32
    %9 = arith.cmpi sgt, %7, %8 : i32
    %c16_i32_1 = arith.constant 16 : i32
    %10 = arith.addi %8, %c16_i32_1 : i32
    %11 = arith.cmpi slt, %4, %10 : i32
    %12 = arith.andi %9, %11 : i1
    %13 = arith.cmpi sgt, %7, %4 : i32
    %14 = arith.andi %12, %13 : i1
    %15 = arith.extui %14 : i1 to i32
    %c0_i32_2 = arith.constant 0 : i32
    %16 = arith.cmpi ne, %15, %c0_i32_2 : i32
    scf.if %16 {
      %17 = arith.index_cast %arg1 : i32 to index
      %18 = memref.load %arg3[%17] : memref<3xi32, #tpu.memory_space<smem>>
      %19 = arith.index_cast %18 : i32 to index
      %20 = memref.load %arg6[%19] : memref<3xf32, #tpu.memory_space<smem>>
      %c0 = arith.constant 0 : index
      %c0_3 = arith.constant 0 : index
      %21 = vector.load %arg4[%c0, %c0_3] : memref<16x256xf32, #tpu.memory_space<vmem>>, vector<16x256xf32>
      %c0_4 = arith.constant 0 : index
      %c0_5 = arith.constant 0 : index
      %c0_6 = arith.constant 0 : index
      %22 = vector.load %arg5[%c0_4, %c0_5, %c0_6] : memref<1x256x8xf32, #tpu.memory_space<vmem>>, vector<1x256x8xf32>
      %23 = vector.shape_cast %22 : vector<1x256x8xf32> to vector<256x8xf32>
      %cst = arith.constant dense<0.000000e+00> : vector<16x8xf32>
      %24 = tpu.matmul %21, %23, %cst {dimension_numbers = #tpu.dot_dimension_numbers<[1], [0], [0], [1], [0, 0, 1, 1], [], []>} : vector<16x256xf32>, vector<256x8xf32>, vector<16x8xf32> -> vector<16x8xf32>
      %25 = tpu.iota {dimensions = array<i32: 0>} : vector<16x1xi32>
      %26 = vector.broadcast %8 : i32 to vector<16x1xi32>
      %27 = arith.addi %26, %25 : vector<16x1xi32>
      %28 = vector.broadcast %4 : i32 to vector<16x1xi32>
      %29 = arith.cmpi sge, %27, %28 : vector<16x1xi32>
      %30 = vector.broadcast %7 : i32 to vector<16x1xi32>
      %31 = arith.cmpi slt, %27, %30 : vector<16x1xi32>
      %32 = arith.andi %29, %31 : vector<16x1xi1>
      %c0_7 = arith.constant 0 : index
      %c0_8 = arith.constant 0 : index
      %33 = vector.load %arg7[%c0_7, %c0_8] : memref<16x8xf32, #tpu.memory_space<vmem>>, vector<16x8xf32>
      %34 = vector.broadcast %20 : f32 to vector<16x8xf32>
      %35 = arith.mulf %24, %34 : vector<16x8xf32>
      %cst_9 = arith.constant 0.000000e+00 : f32
      %36 = vector.shape_cast %32 : vector<16x1xi1> to vector<16x1xi1>
      %37 = vector.broadcast %36 : vector<16x1xi1> to vector<16x8xi1>
      %38 = vector.broadcast %cst_9 : f32 to vector<16x8xf32>
      %39 = arith.select %37, %35, %38 : vector<16x8xi1>, vector<16x8xf32>
      %40 = arith.addf %33, %39 : vector<16x8xf32>
      %c0_10 = arith.constant 0 : index
      %c0_11 = arith.constant 0 : index
      %41 = vector.load %arg7[%c0_10, %c0_11] : memref<16x8xf32, #tpu.memory_space<vmem>>, vector<16x8xf32>
      tpu.vector_store %arg7[%c0_10, %c0_11], %40 {strides = array<i32>} : memref<16x8xf32, #tpu.memory_space<vmem>>, vector<16x8xf32>,
    } else {
    }
    return
  }
  func.func @transform_0(%arg0: i32, %arg1: i32, %arg2: memref<4xi32, #tpu.memory_space<smem>>, %arg3: memref<3xi32, #tpu.memory_space<smem>>) -> (i32, i32) {
    %c0_i32 = arith.constant 0 : i32
    %c0_i32_0 = arith.constant 0 : i32
    return %arg0, %c0_i32 : i32, i32
  }
  func.func @transform_1(%arg0: i32, %arg1: i32, %arg2: memref<4xi32, #tpu.memory_space<smem>>, %arg3: memref<3xi32, #tpu.memory_space<smem>>) -> (i32, i32, i32) {
    %0 = arith.index_cast %arg1 : i32 to index
    %1 = memref.load %arg2[%0] : memref<4xi32, #tpu.memory_space<smem>>
    %c1_i32 = arith.constant 1 : i32
    %2 = arith.addi %arg1, %c1_i32 : i32
    %3 = arith.index_cast %2 : i32 to index
    %4 = memref.load %arg2[%3] : memref<4xi32, #tpu.memory_space<smem>>
    %c16_i32 = arith.constant 16 : i32
    %5 = arith.muli %arg0, %c16_i32 : i32
    %6 = arith.cmpi sgt, %4, %5 : i32
    %c16_i32_0 = arith.constant 16 : i32
    %7 = arith.addi %5, %c16_i32_0 : i32
    %8 = arith.cmpi slt, %1, %7 : i32
    %9 = arith.andi %6, %8 : i1
    %10 = arith.cmpi sgt, %4, %1 : i32
    %11 = arith.andi %9, %10 : i1
    %12 = arith.index_cast %arg1 : i32 to index
    %13 = memref.load %arg3[%12] : memref<3xi32, #tpu.memory_space<smem>>
    %c0_i32 = arith.constant 0 : i32
    %14 = arith.select %11, %13, %c0_i32 : i32
    %c0_i32_1 = arith.constant 0 : i32
    %c0_i32_2 = arith.constant 0 : i32
    %c0_i32_3 = arith.constant 0 : i32
    return %14, %c0_i32_1, %c0_i32_2 : i32, i32, i32
  }
  func.func @transform_2(%arg0: i32, %arg1: i32, %arg2: memref<4xi32, #tpu.memory_space<smem>>, %arg3: memref<3xi32, #tpu.memory_space<smem>>) -> i32 {
    %c0_i32 = arith.constant 0 : i32
    %c0_i32_0 = arith.constant 0 : i32
    return %c0_i32 : i32
  }
  func.func @transform_3(%arg0: i32, %arg1: i32, %arg2: memref<4xi32, #tpu.memory_space<smem>>, %arg3: memref<3xi32, #tpu.memory_space<smem>>) -> (i32, i32) {
    %c0_i32 = arith.constant 0 : i32
    %c0_i32_0 = arith.constant 0 : i32
    return %arg0, %c0_i32 : i32, i32
  }
}

</mosaic_0001>

<bundles_post_ra>
// kernel: tpu_custom_call.1
= control target key start
LH: loop header
LB: loop body
LE: loop exit
PB: predicated region body
PF: predicated region fallthrough
CT: control target
= control target key end

     0   :  { %s1044_s0 = inlined_call_operand.vmem [shape: s32[4], index: 0, kind: input, shape index: {}]   ;;  %s1045_s2 = inlined_call_operand.vmem [shape: f32[32,256], index: 2, kind: input, shape index: {}]   ;;  %s1046_s3 = inlined_call_operand.vmem [shape: f32[3,256,8], index: 3, kind: input, shape index: {}]   ;;  %s1047_s4 = inlined_call_operand.vmem [shape: f32[3], index: 4, kind: input, shape index: {}]   ;;  %s1048_s5 = inlined_call_operand.vmem [shape: f32[32,8], index: 5, kind: output, shape index: {}]   ;;  %s1049_s1 = inlined_call_operand.vmem [shape: s32[3], index: 1, kind: input, shape index: {}]  }
   0x1   :  { %s10_s20 = sshll.u32 %s1044_s0, 4  ;;  %s14_s23 = sshll.u32 %s1049_s1, 4  ;;  %s11_s20 = int_to_ptr.vmem [resolvable:$true] %s10_s20  ;;  %s15_s23 = int_to_ptr.vmem [resolvable:$true] %s14_s23 }
   0x2   :  { %s755_s24 = scalar_lea.vmem %s11_s20, 16  ;;  %p760_p1 = scmp.lt.s32.totalorder %s11_s20, %s11_s20 }
   0x3   :  { %p756_p0 = scmp.ne.s32.totalorder %s11_s20, %s755_s24  ;;  %p761_p2 = scmp.lt.s32.totalorder %s755_s24, %s755_s24 }
   0x5   :  { %p762_p3 = por %p761_p2, %p760_p1 }
   0x7   :  { %p763_p4 = pnand %p762_p3, %p756_p0 }
   0x9   :  { %766 = shalt.err (!%p763_p4)  }
   0xa   :  { %s840_s25 = smov [#allocation3]   ;;  %s767_s26 = scalar_lea.vmem %s15_s23, 16 }
   0xb   :  { %13 = dma.vmem_to_smem %s11_s20, 16, %s840_s25, [#allocation2] }
   0xc   :  { %p768_p5 = scmp.ne.s32.totalorder %s15_s23, %s767_s26  ;;  %p772_p6 = scmp.lt.s32.totalorder %s15_s23, %s15_s23 }
   0xd   :  { %p773_p7 = scmp.lt.s32.totalorder %s767_s26, %s767_s26 }
   0xf   :  { %p774_p8 = por %p773_p7, %p772_p6 }
  0x11   :  { %p775_p9 = pnand %p774_p8, %p768_p5 }
  0x13   :  { %778 = shalt.err (!%p775_p9)  }
  0x14   :  { %s841_s0 = smov [#allocation4]  }
  0x15   :  { %17 = dma.vmem_to_smem %s15_s23, 16, %s841_s0, [#allocation2] }
  0x16   :  { %814 = dma.done.wait [#allocation2], 32 }
  0x17   :  { %815 = vsyncadd [#allocation2], 4294967264 }
  0x18   :  { %19 = sfence }
  0x19   :  { %20 = vsyncpa [#allocation6], 0  ;;  %s880_s1 = smov 0   ;;  %s882_s27 = smov 0  }
  0x1a   :  { %s884_s28 = smov 0   ;;  %s886_s29 = smov 0  }
  0x1b   :  { %s888_s30 = smov 0  }
  0x1c LB: > { %s589_s6 = sadd.s32 4294967295, %s838_s30   ;;  %s35_s7 = sadd.s32 1, %s830_s28  ;;  %s838_s30 = sphi %s888_s30, %s26_s30   ;;  %s834_s29 = sphi %s886_s29, %s1059_s29   ;;  %s830_s28 = sphi %s884_s28, %s1058_s28   ;;  %s826_s27 = sphi %s882_s27, %s1057_s27   ;;  %s822_s1 = sphi %s880_s1, %s1056_s1  }
  0x1d   : > { %p36_p10 = scmp.ge.s32.totalorder %s35_s7, 3  ;;  %s38_s8 = sadd.s32 1, %s834_s29 }
  0x1e   : > { %p595_p11 = scmp.ge.s32.totalorder %s838_s30, 1  ;;  %p170_p12 = scmp.lt.s32.totalorder %s838_s30, 7 }
  0x1f   : > { %s1061_s7 = smov (%p36_p10, %s35_s7), 0  ;;  %s1063_s8 = smov (!%p36_p10, %s38_s8), %s834_s29 }
  0x20   : > { %p913_p13 = pnand %p595_p11, %p170_p12  ;;  %p40_p0 = scmp.ge.s32.totalorder %s1063_s8, 2 }
  0x21   : > { %p917_p1 = scmp.eq.s32.totalorder %s589_s6, 0  ;;  %s183_s13 = sshll.u32 %s1047_s4, 4  ;;  %s184_s13 = int_to_ptr.vmem [resolvable:$true] %s183_s13 }
  0x22   : > { %p705_p2 = pneg %p913_p13  ;;  %s1065_s8 = smov (%p40_p0, %s1063_s8), 0 }
  0x23   : > { %s779_s14 = scalar_lea.vmem %s184_s13, 16  ;;  %p787_p8 = scmp.lt.s32.totalorder %s184_s13, %s184_s13 }
  0x24   : > { %p706_p3 = pnand %p917_p1, %p705_p2  ;;  %p780_p4 = scmp.ne.s32.totalorder %s184_s13, %s779_s14 }
  0x25   : > { %p788_p9 = scmp.lt.s32.totalorder %s779_s14, %s779_s14 }
  0x26   : > { %p781_p5 = pneg %p706_p3 }
  0x27   : > { %p789_p10 = por %p788_p9, %p787_p8 }
  0x28   : > { %p782_p6 = pnand %p781_p5, %p780_p4 }
  0x2a   : > { %p783_p7 = pneg %p782_p6 }
  0x2c   : > { %p790_p11 = pnand %p789_p10, %p783_p7 }
  0x2e   : > { %793 = shalt.err (!%p790_p11)
}
  0x2f   : > { %s842_s15 = smov [#allocation5]   ;;  %242 = sbr.rel (%p913_p13) target bundleno = 349 (0x15d), region = 32 }
  0x30   : > { %708 = dma.vmem_to_smem (!%p706_p3), %s184_s13, 16, %s842_s15, [#allocation6]  }
  0x36   : > { %817 = dma.done.wait (%p917_p1), [#allocation6], 16  }
  0x37   : > { %819 = vsyncadd (%p917_p1), [#allocation6], 4294967280 }
  0x38   : > { %248 = sfence }
  0x39   : > { %s600_s16 = sshll.u32 %s826_s27, 1  ;;  %s294_s17 = sld [smem:[#allocation3 + %s822_s1]] }
  0x3a   : > { %p288_p12 = scmp.lt.s32.totalorder %s600_s16, 3  ;;  %s295_s18 = sadd.s32 1, %s822_s1 }
  0x3b   : > { %s296_s19 = sld [smem:[#allocation3 + %s295_s18]]  ;;  %s940_s20 = sshll.u32 %s826_s27, 4 }
  0x3c   : > { %s1067_s16 = smov (!%p288_p12, %s600_s16), 3  ;;  %s299_s21 = sadd.s32 16, %s940_s20 }
  0x3d   : > { %s613_s22 = sshll.u32 %s1067_s16, 4  ;;  %s608_s23 = sshll.u32 %s1067_s16, 3 }
  0x3e   : > { %s946_s26 = scalar_lea.vmem %s1045_s2, %s613_s22  ;;  %s951_s9 = scalar_lea.vmem %s1048_s5, %s608_s23 }
  0x3f   : > { %p300_p13 = scmp.lt.s32.totalorder %s294_s17, %s299_s21  ;;  %s306_s27 = sld [smem:[#allocation4 + %s822_s1]] }
  0x40   : > { %p609_p6 = scmp.ne.s32.totalorder %s822_s1, 0 }
  0x41   : > { %p298_p0 = scmp.gt.s32.totalorder %s296_s19, %s940_s20  ;;  %p303_p2 = scmp.gt.s32.totalorder %s296_s19, %s294_s17  ;;  %vm337_vm0 = vcmask (!%p609_p6), 64512   ;;  %v843_v0 = vmov (!%p609_p6), 0.0  }
  0x42   : > { %338 = vst.msk [vmem:[%s951_s9] sm:$0xff] (!%p609_p6), %vm337_vm0, %v843_v0  ;;  %339 = vst.msk [vmem:[%s951_s9 + $0x8] sm:$0xff] (!%p609_p6), %vm337_vm0, %v843_v0 }
  0x43   : > { %p301_p1 = pnand %p300_p13, %p298_p0 }
  0x45   : > { %p302_p3 = pneg %p301_p1 }
  0x47   : > { %p304_p4 = pnand %p303_p2, %p302_p3 }
  0x48   : > { %336 = sbr.rel (%p609_p6) target bundleno = 79 (0x4f), region = 40 }
  0x49   : > { %s1069_s27 = smov (%p304_p4, %s306_s27), 0 }
  0x4a   : > { %p308_p5 = scmp.lt.s32.totalorder %s1069_s27, 2 }
  0x4c   : > { %s1071_s27 = smov (!%p308_p5, %s1069_s27), 2 }
  0x4d   : > { %s614_s10 = sshll.u32 %s1071_s27, 8 }
  0x4e   : > { %s958_s13 = scalar_lea.vmem %s1046_s3, %s614_s10 }
  0x4f PF: > { %s964_s14 = sld [smem:[#allocation3 + %s822_s1]] }
  0x50   : > { %s966_s15 = sld [smem:[#allocation3 + %s295_s18]] }
  0x55   : > { %p346_p8 = scmp.lt.s32.totalorder %s964_s14, %s299_s21 }
  0x56   : > { %p344_p7 = scmp.gt.s32.totalorder %s966_s15, %s940_s20  ;;  %p349_p10 = scmp.gt.s32.totalorder %s966_s15, %s964_s14 }
  0x58   : > { %p347_p9 = pnand %p346_p8, %p344_p7 }
  0x5a   : > { %p348_p11 = pneg %p347_p9 }
  0x5c   : > { %p350_p12 = pnand %p349_p10, %p348_p11 }
  0x5d   : > { %v376_v1 = vld [vmem:[%s958_s13 + $0x80] sm:$0xff] (!%p350_p12)  ;;  %v377_v2 = vld [vmem:[%s958_s13 + $0x88] sm:$0xff] (!%p350_p12)  ;;  %v378_v6 = vld [vmem:[%s958_s13 + $0x90] sm:$0xff] (!%p350_p12)  ;;  %v467_v53 = vlaneseq (!%p350_p12)  ;;  %s354_s16 = sld [smem:[#allocation4 + %s822_s1]] (!%p350_p12)  ;;  %v470_v55 = vstv (!%p350_p12), %s940_s20  ;;  %vm494_vm7 = vcmask (!%p350_p12), 64512  }
  0x5e   : > { %353 = sbr.rel (%p350_p12) target bundleno = 349 (0x15d), region = 44  ;;  %v360_v3 = vld [vmem:[%s958_s13] sm:$0xff] (!%p350_p12)  ;;  %v653_v4 = vpack.c.bf16 (!%p350_p12), %v377_v2, %v376_v1  ;;  %v361_v5 = vld [vmem:[%s958_s13 + $0x8] sm:$0xff] (!%p350_p12)  ;;  %v379_v7 = vld [vmem:[%s958_s13 + $0x98] sm:$0xff] (!%p350_p12)  ;;  %v473_v58 = vstv (!%p350_p12), %s964_s14 }
  0x5f   : > { %v655_v8 = vpack.c.bf16 (!%p350_p12), %v361_v5, %v360_v3  ;;  %v657_v9 = vpack.c.bf16 (!%p350_p12), %v379_v7, %v378_v6  ;;  %v362_v10 = vld [vmem:[%s958_s13 + $0x10] sm:$0xff] (!%p350_p12)  ;;  %v363_v11 = vld [vmem:[%s958_s13 + $0x18] sm:$0xff] (!%p350_p12)  ;;  %v380_v12 = vld [vmem:[%s958_s13 + $0xa0] sm:$0xff] (!%p350_p12)  ;;  %v468_v54 = vshrl.u32 (!%p350_p12), %v467_v53, 7  ;;  %v476_v59 = vstv (!%p350_p12), %s966_s15 }
  0x60   : > { %654 = vmatprep.subr.bf16.mxu0 (!%p350_p12), %v653_v4  ;;  %685 = vmatprep.subr.bf16.mxu1 (!%p350_p12), %v653_v4  ;;  %v381_v13 = vld [vmem:[%s958_s13 + $0xa8] sm:$0xff] (!%p350_p12)  ;;  %v659_v14 = vpack.c.bf16 (!%p350_p12), %v363_v11, %v362_v10  ;;  %v364_v16 = vld [vmem:[%s958_s13 + $0x20] sm:$0xff] (!%p350_p12)  ;;  %v382_v18 = vld [vmem:[%s958_s13 + $0xb0] sm:$0xff] (!%p350_p12) }
  0x61   : > { %656 = vmatpush3.bf16.msra.mxu0 (!%p350_p12), %v655_v8  ;;  %693 = vmatpush3.bf16.msra.mxu1 (!%p350_p12), %v655_v8  ;;  %v661_v15 = vpack.c.bf16 (!%p350_p12), %v381_v13, %v380_v12  ;;  %v365_v17 = vld [vmem:[%s958_s13 + $0x28] sm:$0xff] (!%p350_p12)  ;;  %v383_v19 = vld [vmem:[%s958_s13 + $0xb8] sm:$0xff] (!%p350_p12)  ;;  %v366_v22 = vld [vmem:[%s958_s13 + $0x30] sm:$0xff] (!%p350_p12)  ;;  %v469_v56 = vadd.s32 (!%p350_p12), 8, %v468_v54  ;;  %v471_v57 = vadd.s32 (!%p350_p12), %v470_v55, %v468_v54 }
  0x62   : > { %658 = vmatprep.subr.bf16.mxu0 (!%p350_p12), %v657_v9  ;;  %686 = vmatprep.subr.bf16.mxu1 (!%p350_p12), %v657_v9  ;;  %v663_v20 = vpack.c.bf16 (!%p350_p12), %v365_v17, %v364_v16  ;;  %v665_v21 = vpack.c.bf16 (!%p350_p12), %v383_v19, %v382_v18  ;;  %v367_v23 = vld [vmem:[%s958_s13 + $0x38] sm:$0xff] (!%p350_p12)  ;;  %v384_v24 = vld [vmem:[%s958_s13 + $0xc0] sm:$0xff] (!%p350_p12)  ;;  %v385_v25 = vld [vmem:[%s958_s13 + $0xc8] sm:$0xff] (!%p350_p12) }
  0x63   : > { %v357_v26 = vld [vmem:[%s946_s26 + $0x8] sm:$0xff] (!%p350_p12)  ;;  %v359_v27 = vld [vmem:[%s946_s26 + $0x18] sm:$0xff] (!%p350_p12)  ;;  %v667_v28 = vpack.c.bf16 (!%p350_p12), %v367_v23, %v366_v22  ;;  %v669_v29 = vpack.c.bf16 (!%p350_p12), %v385_v25, %v384_v24  ;;  %v368_v30 = vld [vmem:[%s958_s13 + $0x40] sm:$0xff] (!%p350_p12)  ;;  %s355_s17 = sld [smem:[#allocation5 + %s354_s16]] (!%p350_p12)  ;;  %v472_v60 = vadd.s32 (!%p350_p12), %v470_v55, %v469_v56  ;;  %vm1013_vm1 = vcmp.ge.s32.totalorder (!%p350_p12), %v471_v57, %v473_v58 }
  0x64   : > { %456 = vmatprep.mubr.f32.mxu0 (!%p350_p12), %v357_v26  ;;  %v369_v31 = vld [vmem:[%s958_s13 + $0x48] sm:$0xff] (!%p350_p12)  ;;  %v386_v32 = vld [vmem:[%s958_s13 + $0xd0] sm:$0xff] (!%p350_p12)  ;;  %v387_v33 = vld [vmem:[%s958_s13 + $0xd8] sm:$0xff] (!%p350_p12)  ;;  %461 = vmatprep.mubr.f32.mxu1 (!%p350_p12), %v359_v27  ;;  %vm1017_vm2 = vcmp.lt.s32.totalorder (!%p350_p12), %v471_v57, %v476_v59 }
  0x65   : > { %660 = vmatpush3.bf16.msra.mxu0 %v659_v14  ;;  %694 = vmatpush3.bf16.msra.mxu1 %v659_v14  ;;  %v671_v34 = vpack.c.bf16 %v369_v31, %v368_v30  ;;  %v673_v35 = vpack.c.bf16 %v387_v33, %v386_v32  ;;  %v370_v36 = vld [vmem:[%s958_s13 + $0x50] sm:$0xff]  ;;  %v371_v37 = vld [vmem:[%s958_s13 + $0x58] sm:$0xff]  ;;  %v388_v38 = vld [vmem:[%s958_s13 + $0xe0] sm:$0xff]  ;;  %vm475_vm3 = vcmp.ge.s32.totalorder %v472_v60, %v473_v58 }
  0x66   : > { %662 = vmatprep.subr.bf16.mxu0 %v661_v15  ;;  %687 = vmatprep.subr.bf16.mxu1 %v661_v15  ;;  %v389_v39 = vld [vmem:[%s958_s13 + $0xe8] sm:$0xff]  ;;  %v675_v40 = vpack.c.bf16 %v371_v37, %v370_v36  ;;  %v372_v42 = vld [vmem:[%s958_s13 + $0x60] sm:$0xff]  ;;  %v390_v44 = vld [vmem:[%s958_s13 + $0xf0] sm:$0xff]  ;;  %vm478_vm4 = vcmp.lt.s32.totalorder %v472_v60, %v476_v59 }
  0x67   : > { %v677_v41 = vpack.c.bf16 %v389_v39, %v388_v38  ;;  %v373_v43 = vld [vmem:[%s958_s13 + $0x68] sm:$0xff]  ;;  %v391_v45 = vld [vmem:[%s958_s13 + $0xf8] sm:$0xff]  ;;  %v374_v48 = vld [vmem:[%s958_s13 + $0x70] sm:$0xff] }
  0x68   : > { %v679_v46 = vpack.c.bf16 %v373_v43, %v372_v42  ;;  %v681_v47 = vpack.c.bf16 %v391_v45, %v390_v44  ;;  %v375_v49 = vld [vmem:[%s958_s13 + $0x78] sm:$0xff]  ;;  %v356_v51 = vld [vmem:[%s946_s26] sm:$0xff]  ;;  %v358_v52 = vld [vmem:[%s946_s26 + $0x10] sm:$0xff] }
  0x69   : > { %664 = vmatpush3.bf16.msra.mxu0 %v663_v20  ;;  %695 = vmatpush3.bf16.msra.mxu1 %v663_v20  ;;  %v683_v50 = vpack.c.bf16 %v375_v49, %v374_v48  ;;  %v483_v2 = vstv %s355_s17  ;;  %vm479_vm5 = vmand %vm1013_vm1, %vm1017_vm2  ;;  %v481_v6 = vld [vmem:[%s951_s9] sm:$0xff]  ;;  %v482_v8 = vld [vmem:[%s951_s9 + $0x8] sm:$0xff] }
  0x6a   : > { %666 = vmatprep.subr.bf16.mxu0 %v665_v21  ;;  %688 = vmatprep.subr.bf16.mxu1 %v665_v21  ;;  %vm480_vm6 = vmand %vm475_vm3, %vm478_vm4 }
  0x6d   : > { %668 = vmatpush3.bf16.msra.mxu0 %v667_v28  ;;  %696 = vmatpush3.bf16.msra.mxu1 %v667_v28 }
  0x6e   : > { %670 = vmatprep.subr.bf16.mxu0 %v669_v29  ;;  %689 = vmatprep.subr.bf16.mxu1 %v669_v29 }
  0x71   : > { %672 = vmatpush3.bf16.msra.mxu0 %v671_v34  ;;  %697 = vmatpush3.bf16.msra.mxu1 %v671_v34 }
  0x72   : > { %674 = vmatprep.subr.bf16.mxu0 %v673_v35  ;;  %690 = vmatprep.subr.bf16.mxu1 %v673_v35 }
  0x75   : > { %676 = vmatpush3.bf16.msra.mxu0 %v675_v40  ;;  %698 = vmatpush3.bf16.msra.mxu1 %v675_v40 }
  0x76   : > { %678 = vmatprep.subr.bf16.mxu0 %v677_v41  ;;  %691 = vmatprep.subr.bf16.mxu1 %v677_v41 }
  0x79   : > { %680 = vmatpush3.bf16.msra.mxu0 %v679_v46  ;;  %699 = vmatpush3.bf16.msra.mxu1 %v679_v46 }
  0x7a   : > { %682 = vmatprep.subr.bf16.mxu0 %v681_v47  ;;  %692 = vmatprep.subr.bf16.mxu1 %v681_v47 }
  0x7d   : > { %684 = vmatpush3.bf16.msra.mxu0 %v683_v50  ;;  %700 = vmatpush3.bf16.msra.mxu1 %v683_v50 }
  0x80   : > { %457 = vmatmul.mubr.f32.vlgmr.msra.gmra.mrb[0].mxu0 %v356_v51  ;;  %462 = vmatmul.mubr.f32.vlgmr.msra.gmra.mrb[0].mxu1 %v358_v52 }
 0x153   : > { %v647_v63 = vpop.f32.mrb[0].mxu0  ;;  %v650_v0 = vpop.f32.mrb[0].mxu1 }
 0x154   : > { %v648_v1 = vpop.f32.mrb[1].mxu0  ;;  %v651_v3 = vpop.f32.mrb[1].mxu1 }
 0x155   : > { %v649_v4 = vadd.f32 %v648_v1, %v647_v63  ;;  %v652_v5 = vadd.f32 %v651_v3, %v650_v0 }
 0x157   : > { %v484_v7 = vmul.f32 %v649_v4, %v483_v2  ;;  %v485_v9 = vmul.f32 %v652_v5, %v483_v2 }
 0x159   : > { %v490_v10 = vsel %vm479_vm5, %v484_v7, 0.0  ;;  %v491_v11 = vsel %vm480_vm6, %v485_v9, 0.0 }
 0x15a   : > { %v492_v12 = vadd.f32 %v490_v10, %v481_v6  ;;  %v493_v13 = vadd.f32 %v491_v11, %v482_v8 }
 0x15c   : > { %495 = vst.msk [vmem:[%s951_s9] sm:$0xff] %vm494_vm7, %v492_v12  ;;  %496 = vst.msk [vmem:[%s951_s9 + $0x8] sm:$0xff] %vm494_vm7, %v493_v13 }
 0x15d PF: > { %s26_s30 = sadd.s32 1, %s838_s30   ;;  %s1056_s1 = smov %s830_s28 }
 0x15e   : > { %p23_p13 = scmp.ge.s32.totalorder %s26_s30, 8   ;;  %s1057_s27 = smov %s834_s29 }
 0x15f   : > { %s1058_s28 = smov %s1061_s7  ;;  %s1059_s29 = smov %s1065_s8 }
 0x160   :  { %25 = sbr.rel (!%p23_p13) target bundleno = 28 (0x1c), region = 78 }
 0x167   :  { %519 = vsyncpa [#allocation6], 1 }
 0x168   :  { %521 = vsyncpa [#allocation6 + $0x1], 1 }

</bundles_post_ra>
